<compile_context>
chip_gen: v7x
topology: tpu7x:2x2x1
jax: 0.10.0
libtpu: 0.0.40
codegen_flags: <defaults>
</compile_context>

<pallas_src>
import functools
import math

import jax
import jax.numpy as jnp
from jax import lax
from jax.experimental import pallas as pl
from jax.experimental.pallas import tpu as pltpu


# ----------------------------- Pallas kernels -----------------------------

def _recurrence(x2d, h0, w_ih_t, w_hh_t, b_rnn, S, B):
    """Unrolled tanh-RNN.

    x2d: (S*B, I) seq-major flattened input (row t*B + b == x[t, b, :]).
    Returns (list of S hidden states, each (B, H); final hidden state (B, H)).
    """
    # Hoisted input projection + combined bias: one matmul / one broadcast for the whole seq.
    xW = jnp.dot(x2d, w_ih_t, preferred_element_type=jnp.float32) + b_rnn   # (S*B, H)
    h = h0
    hs = []
    for t in range(S):                                   # S is small & static -> full unroll
        h = jnp.tanh(xW[t * B:(t + 1) * B, :]
                     + jnp.dot(h, w_hh_t, preferred_element_type=jnp.float32))
        hs.append(h)
    return hs, h


def fused_attn_kernel(S, B,
                      x_ref, h0_ref, wih_ref, whh_ref, brnn_ref,
                      wqkv_ref, bqkv_ref, wo_ref, bo_ref, wfc_ref, bfc_ref,
                      out_ref, hN_ref):
    """RNN recurrence + single-head self-attention (+residual) + exp(fc), fully fused."""
    H = h0_ref.shape[-1]

    hs, h_final = _recurrence(x_ref[...], h0_ref[...], wih_ref[...], whh_ref[...],
                              brnn_ref[...], S, B)
    hN_ref[...] = h_final

    # All hidden states, batch folded into rows: row index = t*B + b.
    h_all = jnp.concatenate(hs, axis=0)                                     # (S*B, H)

    # Fused Q/K/V projection: one matmul, 3H-wide (more lane-dense) output.
    qkv = jnp.dot(h_all, wqkv_ref[...], preferred_element_type=jnp.float32) + bqkv_ref[...]
    # Only the last timestep's queries are needed: forward() consumes x[-1] only.
    q_last = qkv[(S - 1) * B:, 0:H]                                         # (B, H)
    k = qkv[:, H:2 * H]                                                     # (S*B, H)
    v = qkv[:, 2 * H:3 * H]                                                 # (S*B, H)

    scale = 1.0 / math.sqrt(H)
    s = lax.dot_general(q_last, k, (((1,), (1,)), ((), ())),
                        preferred_element_type=jnp.float32) * scale         # (B, S*B)

    # Block-diagonal mask: query of batch b attends only keys whose row satisfies col % B == b.
    qb = lax.broadcasted_iota(jnp.int32, (B, S * B), 0)
    kb = lax.broadcasted_iota(jnp.int32, (B, S * B), 1) % B
    s = jnp.where(qb == kb, s, -1e30)

    s = s - jnp.max(s, axis=-1, keepdims=True)
    p = jnp.exp(s)
    # approx=False keeps full precision for the rtol=1e-4 / atol=1e-5 check.
    p = p * pl.reciprocal(jnp.sum(p, axis=-1, keepdims=True), approx=False)

    a = jnp.dot(p, v, preferred_element_type=jnp.float32)                   # (B, H)
    attn_out = jnp.dot(a, wo_ref[...], preferred_element_type=jnp.float32) + bo_ref[...]

    last = h_final + attn_out                                               # residual (x + attn)[-1]
    out_ref[...] = jnp.exp(jnp.dot(last, wfc_ref[...], preferred_element_type=jnp.float32)
                           + bfc_ref[...])


def fused_noattn_kernel(S, B,
                        x_ref, h0_ref, wih_ref, whh_ref, brnn_ref,
                        wfc_ref, bfc_ref,
                        out_ref, hN_ref):
    """RNN recurrence + exp(fc) (attention_flag=False path)."""
    _, h_final = _recurrence(x_ref[...], h0_ref[...], wih_ref[...], whh_ref[...],
                             brnn_ref[...], S, B)
    hN_ref[...] = h_final
    out_ref[...] = jnp.exp(jnp.dot(h_final, wfc_ref[...], preferred_element_type=jnp.float32)
                           + bfc_ref[...])


# ----------------------------- wrappers -----------------------------------

def prepare_params(params):
    """One-time layout prep (transposes, QKV fusion, bias folding) at parameter-load time."""
    H = params["w_hh"].shape[0]
    n_out = params["fc_b"].shape[0]
    return {
        "w_ih_t": params["w_ih"].T,                                     # (I, H)
        "w_hh_t": params["w_hh"].T,                                     # (H, H)
        "b_rnn": (params["b_ih"] + params["b_hh"]).reshape(1, H),       # (1, H)
        "w_qkv": params["in_proj_w"].T,                                 # (H, 3H) = [Wq^T|Wk^T|Wv^T]
        "b_qkv": params["in_proj_b"].reshape(1, 3 * H),                 # (1, 3H)
        "w_o_t": params["out_proj_w"].T,                                # (H, H)
        "b_o": params["out_proj_b"].reshape(1, H),                      # (1, H)
        "w_fc_t": params["fc_w"].T,                                     # (H, n_out)
        "b_fc": params["fc_b"].reshape(1, n_out),                       # (1, n_out)
    }


def rnn_hlr_forward(x, hx, prep, attention_flag=True):
    """Equivalent of RNN.forward(x, hx) with network='RNN'. x: (S,B,I), hx: (1,B,H)."""
    S, B, I = x.shape
    H = prep["w_hh_t"].shape[0]
    n_out = prep["b_fc"].shape[-1]

    x2d = x.reshape(S * B, I)       # seq-major flatten (row t*B + b == x[t, b, :])
    h0 = hx[0]

    vspec = pl.BlockSpec(memory_space=pltpu.MemorySpace.VMEM)
    out_shape = (jax.ShapeDtypeStruct((B, n_out), jnp.float32),
                 jax.ShapeDtypeStruct((B, H), jnp.float32))

    if attention_flag:
        kernel = functools.partial(fused_attn_kernel, S, B)
        args = (x2d, h0, prep["w_ih_t"], prep["w_hh_t"], prep["b_rnn"],
                prep["w_qkv"], prep["b_qkv"], prep["w_o_t"], prep["b_o"],
                prep["w_fc_t"], prep["b_fc"])
    else:
        kernel = functools.partial(fused_noattn_kernel, S, B)
        args = (x2d, h0, prep["w_ih_t"], prep["w_hh_t"], prep["b_rnn"],
                prep["w_fc_t"], prep["b_fc"])

    output, hN = pl.pallas_call(
        kernel,
        out_shape=out_shape,
        in_specs=[vspec] * len(args),
        out_specs=(vspec, vspec),
    )(*args)
    return output, hN[None]                                             # h: (1, B, H)


# ----------------------------- reference (pure JAX) ------------------------

def ref_forward(x, hx, p):
    S, B, _ = x.shape
    H = p["w_hh"].shape[0]
    h = hx[0]
    outs = []
    for t in range(S):
        h = jnp.tanh(x[t] @ p["w_ih"].T + p["b_ih"] + h @ p["w_hh"].T + p["b_hh"])
        outs.append(h)
    out = jnp.stack(outs)                                               # (S, B, H)
    q = out @ p["in_proj_w"][:H].T + p["in_proj_b"][:H]
    k = out @ p["in_proj_w"][H:2 * H].T + p["in_proj_b"][H:2 * H]
    v = out @ p["in_proj_w"][2 * H:].T + p["in_proj_b"][2 * H:]
    qb, kb, vb = (jnp.transpose(t_, (1, 0, 2)) for t_ in (q, k, v))
    s = jnp.einsum("bqd,bkd->bqk", qb, kb) / math.sqrt(H)
    attn = jax.nn.softmax(s, axis=-1)
    a = jnp.einsum("bqk,bkd->bqd", attn, vb)
    ao = a @ p["out_proj_w"].T + p["out_proj_b"]                        # (B, S, H)
    xb = jnp.transpose(out, (1, 0, 2)) + ao
    last = xb[:, -1, :]
    return jnp.exp(last @ p["fc_w"].T + p["fc_b"]), h[None]


def ref_forward_noattn(x, hx, p):
    S, B, _ = x.shape
    h = hx[0]
    for t in range(S):
        h = jnp.tanh(x[t] @ p["w_ih"].T + p["b_ih"] + h @ p["w_hh"].T + p["b_hh"])
    return jnp.exp(h @ p["fc_w"].T + p["fc_b"]), h[None]


# ----------------------------- main ----------------------------------------

if __name__ == "__main__":
    n_letters, n_hidden, n_categories = 16, 32, 8
    seq, batch = 8, 4

    key = jax.random.PRNGKey(0)
    ks = jax.random.split(key, 12)
    u = lambda k, shape, s=0.1: jax.random.uniform(k, shape, jnp.float32, -s, s)

    params = {
        # nn.RNN(n_letters, n_hidden, 1)
        "w_ih": u(ks[0], (n_hidden, n_letters)),
        "w_hh": u(ks[1], (n_hidden, n_hidden)),
        "b_ih": u(ks[2], (n_hidden,)),
        "b_hh": u(ks[3], (n_hidden,)),
        # nn.MultiheadAttention(embed_dim=n_hidden, num_heads=1)
        "in_proj_w": u(ks[4], (3 * n_hidden, n_hidden)),
        "in_proj_b": u(ks[5], (3 * n_hidden,)),
        "out_proj_w": u(ks[6], (n_hidden, n_hidden)),
        "out_proj_b": u(ks[7], (n_hidden,)),
        # nn.Linear(n_hidden, n_categories)
        "fc_w": u(ks[8], (n_categories, n_hidden)),
        "fc_b": u(ks[9], (n_categories,)),
    }

    x = u(ks[10], (seq, batch, n_letters), 1.0)        # (S, B, I)
    hx = u(ks[11], (1, batch, n_hidden), 1.0)          # (1, B, H)

    # one-time weight prep (outside the latency-critical forward path)
    prep = jax.tree_util.tree_map(jax.block_until_ready, prepare_params(params))

    fwd = jax.jit(rnn_hlr_forward, static_argnames=("attention_flag",))

    # attention path (module default)
    out, h = fwd(x, hx, prep, attention_flag=True)
    out = jax.block_until_ready(out)
    h = jax.block_until_ready(h)

    ref_out, ref_h = ref_forward(x, hx, params)
    assert out.shape == (batch, n_categories) and h.shape == (1, batch, n_hidden)
    assert jnp.allclose(out, ref_out, rtol=1e-4, atol=1e-5)
    assert jnp.allclose(h, ref_h, rtol=1e-4, atol=1e-5)

    # no-attention path
    out2, h2 = fwd(x, hx, prep, attention_flag=False)
    out2 = jax.block_until_ready(out2)
    h2 = jax.block_until_ready(h2)
    ref_out2, ref_h2 = ref_forward_noattn(x, hx, params)
    assert jnp.allclose(out2, ref_out2, rtol=1e-4, atol=1e-5)
    assert jnp.allclose(h2, ref_h2, rtol=1e-4, atol=1e-5)

    print("KERNEL_OK")
</pallas_src>

<mosaic_0001>
module attributes {stable_mosaic.version = 11 : i64} {
  func.func @fused_attn_kernel(%arg0: memref<32x16xf32, #tpu.memory_space<vmem>>, %arg1: memref<4x32xf32, #tpu.memory_space<vmem>>, %arg2: memref<16x32xf32, #tpu.memory_space<vmem>>, %arg3: memref<32x32xf32, #tpu.memory_space<vmem>>, %arg4: memref<1x32xf32, #tpu.memory_space<vmem>>, %arg5: memref<32x96xf32, #tpu.memory_space<vmem>>, %arg6: memref<1x96xf32, #tpu.memory_space<vmem>>, %arg7: memref<32x32xf32, #tpu.memory_space<vmem>>, %arg8: memref<1x32xf32, #tpu.memory_space<vmem>>, %arg9: memref<32x8xf32, #tpu.memory_space<vmem>>, %arg10: memref<1x8xf32, #tpu.memory_space<vmem>>, %arg11: memref<4x8xf32, #tpu.memory_space<vmem>>, %arg12: memref<4x32xf32, #tpu.memory_space<vmem>>) attributes {dimension_semantics = [], scalar_prefetch = 0 : i64, scratch_operands = 0 : i64, tpu.core_type = #tpu.core_type<tc>} {
    %c0 = arith.constant 0 : index
    %c0_0 = arith.constant 0 : index
    %0 = vector.load %arg0[%c0, %c0_0] : memref<32x16xf32, #tpu.memory_space<vmem>>, vector<32x16xf32>
    %c0_1 = arith.constant 0 : index
    %c0_2 = arith.constant 0 : index
    %1 = vector.load %arg1[%c0_1, %c0_2] : memref<4x32xf32, #tpu.memory_space<vmem>>, vector<4x32xf32>
    %c0_3 = arith.constant 0 : index
    %c0_4 = arith.constant 0 : index
    %2 = vector.load %arg2[%c0_3, %c0_4] : memref<16x32xf32, #tpu.memory_space<vmem>>, vector<16x32xf32>
    %c0_5 = arith.constant 0 : index
    %c0_6 = arith.constant 0 : index
    %3 = vector.load %arg3[%c0_5, %c0_6] : memref<32x32xf32, #tpu.memory_space<vmem>>, vector<32x32xf32>
    %c0_7 = arith.constant 0 : index
    %c0_8 = arith.constant 0 : index
    %4 = vector.load %arg4[%c0_7, %c0_8] : memref<1x32xf32, #tpu.memory_space<vmem>>, vector<1x32xf32>
    %cst = arith.constant dense<0.000000e+00> : vector<32x32xf32>
    %5 = tpu.matmul %0, %2, %cst {dimension_numbers = #tpu.dot_dimension_numbers<[1], [0], [0], [1], [0, 0, 1, 1], [], []>} : vector<32x16xf32>, vector<16x32xf32>, vector<32x32xf32> -> vector<32x32xf32>
    %6 = vector.broadcast %4 : vector<1x32xf32> to vector<32x32xf32>
    %7 = arith.addf %5, %6 : vector<32x32xf32>
    %8 = vector.extract_strided_slice %7 {offsets = [0, 0], sizes = [4, 32], strides = [1, 1]} : vector<32x32xf32> to vector<4x32xf32>
    %cst_9 = arith.constant dense<0.000000e+00> : vector<4x32xf32>
    %9 = tpu.matmul %1, %3, %cst_9 {dimension_numbers = #tpu.dot_dimension_numbers<[1], [0], [0], [1], [0, 0, 1, 1], [], []>} : vector<4x32xf32>, vector<32x32xf32>, vector<4x32xf32> -> vector<4x32xf32>
    %10 = arith.addf %8, %9 : vector<4x32xf32>
    %11 = math.tanh %10 : vector<4x32xf32>
    %12 = vector.extract_strided_slice %7 {offsets = [4, 0], sizes = [4, 32], strides = [1, 1]} : vector<32x32xf32> to vector<4x32xf32>
    %cst_10 = arith.constant dense<0.000000e+00> : vector<4x32xf32>
    %13 = tpu.matmul %11, %3, %cst_10 {dimension_numbers = #tpu.dot_dimension_numbers<[1], [0], [0], [1], [0, 0, 1, 1], [], []>} : vector<4x32xf32>, vector<32x32xf32>, vector<4x32xf32> -> vector<4x32xf32>
    %14 = arith.addf %12, %13 : vector<4x32xf32>
    %15 = math.tanh %14 : vector<4x32xf32>
    %16 = vector.extract_strided_slice %7 {offsets = [8, 0], sizes = [4, 32], strides = [1, 1]} : vector<32x32xf32> to vector<4x32xf32>
    %cst_11 = arith.constant dense<0.000000e+00> : vector<4x32xf32>
    %17 = tpu.matmul %15, %3, %cst_11 {dimension_numbers = #tpu.dot_dimension_numbers<[1], [0], [0], [1], [0, 0, 1, 1], [], []>} : vector<4x32xf32>, vector<32x32xf32>, vector<4x32xf32> -> vector<4x32xf32>
    %18 = arith.addf %16, %17 : vector<4x32xf32>
    %19 = math.tanh %18 : vector<4x32xf32>
    %20 = vector.extract_strided_slice %7 {offsets = [12, 0], sizes = [4, 32], strides = [1, 1]} : vector<32x32xf32> to vector<4x32xf32>
    %cst_12 = arith.constant dense<0.000000e+00> : vector<4x32xf32>
    %21 = tpu.matmul %19, %3, %cst_12 {dimension_numbers = #tpu.dot_dimension_numbers<[1], [0], [0], [1], [0, 0, 1, 1], [], []>} : vector<4x32xf32>, vector<32x32xf32>, vector<4x32xf32> -> vector<4x32xf32>
    %22 = arith.addf %20, %21 : vector<4x32xf32>
    %23 = math.tanh %22 : vector<4x32xf32>
    %24 = vector.extract_strided_slice %7 {offsets = [16, 0], sizes = [4, 32], strides = [1, 1]} : vector<32x32xf32> to vector<4x32xf32>
    %cst_13 = arith.constant dense<0.000000e+00> : vector<4x32xf32>
    %25 = tpu.matmul %23, %3, %cst_13 {dimension_numbers = #tpu.dot_dimension_numbers<[1], [0], [0], [1], [0, 0, 1, 1], [], []>} : vector<4x32xf32>, vector<32x32xf32>, vector<4x32xf32> -> vector<4x32xf32>
    %26 = arith.addf %24, %25 : vector<4x32xf32>
    %27 = math.tanh %26 : vector<4x32xf32>
    %28 = vector.extract_strided_slice %7 {offsets = [20, 0], sizes = [4, 32], strides = [1, 1]} : vector<32x32xf32> to vector<4x32xf32>
    %cst_14 = arith.constant dense<0.000000e+00> : vector<4x32xf32>
    %29 = tpu.matmul %27, %3, %cst_14 {dimension_numbers = #tpu.dot_dimension_numbers<[1], [0], [0], [1], [0, 0, 1, 1], [], []>} : vector<4x32xf32>, vector<32x32xf32>, vector<4x32xf32> -> vector<4x32xf32>
    %30 = arith.addf %28, %29 : vector<4x32xf32>
    %31 = math.tanh %30 : vector<4x32xf32>
    %32 = vector.extract_strided_slice %7 {offsets = [24, 0], sizes = [4, 32], strides = [1, 1]} : vector<32x32xf32> to vector<4x32xf32>
    %cst_15 = arith.constant dense<0.000000e+00> : vector<4x32xf32>
    %33 = tpu.matmul %31, %3, %cst_15 {dimension_numbers = #tpu.dot_dimension_numbers<[1], [0], [0], [1], [0, 0, 1, 1], [], []>} : vector<4x32xf32>, vector<32x32xf32>, vector<4x32xf32> -> vector<4x32xf32>
    %34 = arith.addf %32, %33 : vector<4x32xf32>
    %35 = math.tanh %34 : vector<4x32xf32>
    %36 = vector.extract_strided_slice %7 {offsets = [28, 0], sizes = [4, 32], strides = [1, 1]} : vector<32x32xf32> to vector<4x32xf32>
    %cst_16 = arith.constant dense<0.000000e+00> : vector<4x32xf32>
    %37 = tpu.matmul %35, %3, %cst_16 {dimension_numbers = #tpu.dot_dimension_numbers<[1], [0], [0], [1], [0, 0, 1, 1], [], []>} : vector<4x32xf32>, vector<32x32xf32>, vector<4x32xf32> -> vector<4x32xf32>
    %38 = arith.addf %36, %37 : vector<4x32xf32>
    %39 = math.tanh %38 : vector<4x32xf32>
    %c0_17 = arith.constant 0 : index
    %c0_18 = arith.constant 0 : index
    %40 = vector.load %arg12[%c0_17, %c0_18] : memref<4x32xf32, #tpu.memory_space<vmem>>, vector<4x32xf32>
    tpu.vector_store %arg12[%c0_17, %c0_18], %39 {strides = array<i32>} : memref<4x32xf32, #tpu.memory_space<vmem>>, vector<4x32xf32>,
    %41 = tpu.concatenate %11, %15, %19, %23, %27, %31, %35, %39 in 0 : vector<4x32xf32>, vector<4x32xf32>, vector<4x32xf32>, vector<4x32xf32>, vector<4x32xf32>, vector<4x32xf32>, vector<4x32xf32>, vector<4x32xf32> -> vector<32x32xf32>
    %c0_19 = arith.constant 0 : index
    %c0_20 = arith.constant 0 : index
    %42 = vector.load %arg5[%c0_19, %c0_20] : memref<32x96xf32, #tpu.memory_space<vmem>>, vector<32x96xf32>
    %cst_21 = arith.constant dense<0.000000e+00> : vector<32x96xf32>
    %43 = tpu.matmul %41, %42, %cst_21 {dimension_numbers = #tpu.dot_dimension_numbers<[1], [0], [0], [1], [0, 0, 1, 1], [], []>} : vector<32x32xf32>, vector<32x96xf32>, vector<32x96xf32> -> vector<32x96xf32>
    %c0_22 = arith.constant 0 : index
    %c0_23 = arith.constant 0 : index
    %44 = vector.load %arg6[%c0_22, %c0_23] : memref<1x96xf32, #tpu.memory_space<vmem>>, vector<1x96xf32>
    %45 = vector.broadcast %44 : vector<1x96xf32> to vector<32x96xf32>
    %46 = arith.addf %43, %45 : vector<32x96xf32>
    %47 = vector.extract_strided_slice %46 {offsets = [28, 0], sizes = [4, 32], strides = [1, 1]} : vector<32x96xf32> to vector<4x32xf32>
    %48 = vector.extract_strided_slice %46 {offsets = [0, 32], sizes = [32, 32], strides = [1, 1]} : vector<32x96xf32> to vector<32x32xf32>
    %49 = vector.extract_strided_slice %46 {offsets = [0, 64], sizes = [32, 32], strides = [1, 1]} : vector<32x96xf32> to vector<32x32xf32>
    %cst_24 = arith.constant dense<0.000000e+00> : vector<4x32xf32>
    %50 = tpu.matmul %47, %48, %cst_24 {dimension_numbers = #tpu.dot_dimension_numbers<[1], [1], [0], [0], [0, 0, 1, 0], [], []>} : vector<4x32xf32>, vector<32x32xf32>, vector<4x32xf32> -> vector<4x32xf32>
    %cst_25 = arith.constant 0.176776692 : f32
    %51 = vector.broadcast %cst_25 : f32 to vector<4x32xf32>
    %52 = arith.mulf %50, %51 : vector<4x32xf32>
    %53 = tpu.iota {dimensions = array<i32: 0>} : vector<4x32xi32>
    %54 = tpu.iota {dimensions = array<i32: 1>} : vector<4x32xi32>
    %c4_i32 = arith.constant 4 : i32
    %c0_i32 = arith.constant 0 : i32
    %55 = arith.cmpi eq, %c4_i32, %c0_i32 : i32
    %c1_i32 = arith.constant 1 : i32
    %56 = arith.select %55, %c1_i32, %c4_i32 : i32
    %57 = vector.broadcast %56 : i32 to vector<4x32xi32>
    %58 = arith.remsi %54, %57 : vector<4x32xi32>
    %c0_i32_26 = arith.constant 0 : i32
    %59 = vector.broadcast %c0_i32_26 : i32 to vector<4x32xi32>
    %60 = arith.cmpi ne, %58, %59 : vector<4x32xi32>
    %c0_i32_27 = arith.constant 0 : i32
    %61 = vector.broadcast %c0_i32_27 : i32 to vector<4x32xi32>
    %62 = arith.cmpi slt, %58, %61 : vector<4x32xi32>
    %c0_i32_28 = arith.constant 0 : i32
    %63 = arith.cmpi slt, %56, %c0_i32_28 : i32
    %64 = vector.broadcast %63 : i1 to vector<4x32xi1>
    %65 = vector.broadcast %64 : vector<4x32xi1> to vector<4x32xi1>
    %66 = arith.xori %62, %65 : vector<4x32xi1>
    %67 = arith.andi %66, %60 : vector<4x32xi1>
    %68 = vector.broadcast %56 : i32 to vector<4x32xi32>
    %69 = arith.addi %58, %68 : vector<4x32xi32>
    %70 = arith.select %67, %69, %58 : vector<4x32xi1>, vector<4x32xi32>
    %71 = arith.cmpi eq, %53, %70 : vector<4x32xi32>
    %cst_29 = arith.constant -1.000000e+30 : f32
    %72 = vector.broadcast %cst_29 : f32 to vector<4x32xf32>
    %73 = arith.select %71, %52, %72 : vector<4x32xi1>, vector<4x32xf32>
    %cst_30 = arith.constant dense<0xFF800000> : vector<4xf32>
    %74 = vector.multi_reduction <maximumf>, %73, %cst_30 [1] : vector<4x32xf32> to vector<4xf32>
    %75 = vector.shape_cast %74 : vector<4xf32> to vector<4x1xf32>
    %76 = vector.broadcast %75 : vector<4x1xf32> to vector<4x32xf32>
    %77 = arith.subf %73, %76 : vector<4x32xf32>
    %78 = math.exp %77 : vector<4x32xf32>
    %cst_31 = arith.constant dense<0.000000e+00> : vector<4xf32>
    %79 = vector.multi_reduction <add>, %78, %cst_31 [1] : vector<4x32xf32> to vector<4xf32>
    %80 = vector.shape_cast %79 : vector<4xf32> to vector<4x1xf32>
    %81 = tpu.reciprocal %80 : vector<4x1xf32> -> vector<4x1xf32>
    %82 = vector.broadcast %81 : vector<4x1xf32> to vector<4x32xf32>
    %83 = arith.mulf %78, %82 : vector<4x32xf32>
    %cst_32 = arith.constant dense<0.000000e+00> : vector<4x32xf32>
    %84 = tpu.matmul %83, %49, %cst_32 {dimension_numbers = #tpu.dot_dimension_numbers<[1], [0], [0], [1], [0, 0, 1, 1], [], []>} : vector<4x32xf32>, vector<32x32xf32>, vector<4x32xf32> -> vector<4x32xf32>
    %c0_33 = arith.constant 0 : index
    %c0_34 = arith.constant 0 : index
    %85 = vector.load %arg7[%c0_33, %c0_34] : memref<32x32xf32, #tpu.memory_space<vmem>>, vector<32x32xf32>
    %cst_35 = arith.constant dense<0.000000e+00> : vector<4x32xf32>
    %86 = tpu.matmul %84, %85, %cst_35 {dimension_numbers = #tpu.dot_dimension_numbers<[1], [0], [0], [1], [0, 0, 1, 1], [], []>} : vector<4x32xf32>, vector<32x32xf32>, vector<4x32xf32> -> vector<4x32xf32>
    %c0_36 = arith.constant 0 : index
    %c0_37 = arith.constant 0 : index
    %87 = vector.load %arg8[%c0_36, %c0_37] : memref<1x32xf32, #tpu.memory_space<vmem>>, vector<1x32xf32>
    %88 = vector.broadcast %87 : vector<1x32xf32> to vector<4x32xf32>
    %89 = arith.addf %86, %88 : vector<4x32xf32>
    %90 = arith.addf %39, %89 : vector<4x32xf32>
    %c0_38 = arith.constant 0 : index
    %c0_39 = arith.constant 0 : index
    %91 = vector.load %arg9[%c0_38, %c0_39] : memref<32x8xf32, #tpu.memory_space<vmem>>, vector<32x8xf32>
    %cst_40 = arith.constant dense<0.000000e+00> : vector<4x8xf32>
    %92 = tpu.matmul %90, %91, %cst_40 {dimension_numbers = #tpu.dot_dimension_numbers<[1], [0], [0], [1], [0, 0, 1, 1], [], []>} : vector<4x32xf32>, vector<32x8xf32>, vector<4x8xf32> -> vector<4x8xf32>
    %c0_41 = arith.constant 0 : index
    %c0_42 = arith.constant 0 : index
    %93 = vector.load %arg10[%c0_41, %c0_42] : memref<1x8xf32, #tpu.memory_space<vmem>>, vector<1x8xf32>
    %94 = vector.broadcast %93 : vector<1x8xf32> to vector<4x8xf32>
    %95 = arith.addf %92, %94 : vector<4x8xf32>
    %96 = math.exp %95 : vector<4x8xf32>
    %c0_43 = arith.constant 0 : index
    %c0_44 = arith.constant 0 : index
    %97 = vector.load %arg11[%c0_43, %c0_44] : memref<4x8xf32, #tpu.memory_space<vmem>>, vector<4x8xf32>
    tpu.vector_store %arg11[%c0_43, %c0_44], %96 {strides = array<i32>} : memref<4x8xf32, #tpu.memory_space<vmem>>, vector<4x8xf32>,
    return
  }
}

</mosaic_0001>

<bundles_post_ra>
// kernel: rnn_hlr_forward.1
= control target key start
LH: loop header
LB: loop body
LE: loop exit
PB: predicated region body
PF: predicated region fallthrough
CT: control target
= control target key end

     0   :  { %18 = vsyncpa [#allocation3], 0  ;;  %s2321_s0 = inlined_call_operand.vmem [shape: f32[32,16], index: 0, kind: input, shape index: {}]   ;;  %s2322_s1 = inlined_call_operand.hbm [shape: f32[4,32], index: 1, kind: input, shape index: {}]   ;;  %s2323_s2 = inlined_call_operand.hbm [shape: f32[16,32], index: 2, kind: input, shape index: {}]   ;;  %s2324_s3 = inlined_call_operand.vmem [shape: f32[32,32], index: 3, kind: input, shape index: {}]   ;;  %s2325_s4 = inlined_call_operand.vmem [shape: f32[1,32], index: 4, kind: input, shape index: {}]   ;;  %s2326_s5 = inlined_call_operand.hbm [shape: f32[32,96], index: 5, kind: input, shape index: {}]   ;;  %s2327_s6 = inlined_call_operand.vmem [shape: f32[1,96], index: 6, kind: input, shape index: {}]   ;;  %s2328_s7 = inlined_call_operand.hbm [shape: f32[32,32], index: 7, kind: input, shape index: {}]   ;;  %s2329_s8 = inlined_call_operand.hbm [shape: f32[1,32], index: 8, kind: input, shape index: {}]   ;;  %s2330_s9 = inlined_call_operand.vmem [shape: f32[32,8], index: 9, kind: input, shape index: {}]   ;;  %s2331_s10 = inlined_call_operand.hbm [shape: f32[1,8], index: 10, kind: input, shape index: {}]   ;;  %s2332_s11 = inlined_call_operand.hbm [shape: f32[4,8], index: 11, kind: output, shape index: {0}]   ;;  %s2333_s12 = inlined_call_operand.hbm [shape: f32[4,32], index: 12, kind: output, shape index: {1}]  }
   0x1   :  { %19 = vsyncpa [#allocation6], 0 }
   0x2   :  { %20 = vsyncpa [#allocation9], 0 }
   0x3   :  { %21 = vsyncpa [#allocation12], 0 }
   0x4   :  { %22 = vsyncpa [#allocation4], 0 }
   0x5   :  { %23 = vsyncpa [#allocation15], 0  ;;  %s1972_s21 = smov [#allocation5]   ;;  %s1784_s25 = scalar_lea.hbm %s2323_s2, 256 }
   0x6   :  { %s41_s22 = sshll.u32 %s1972_s21, 4  ;;  %p1785_p0 = scmp.ne.s32.totalorder %s2323_s2, %s1784_s25  ;;  %s42_s22 = int_to_ptr.vmem [resolvable:$true] %s41_s22 }
   0x7   :  { %p1788_p1 = scmp.lt.u32.totalorder %s1784_s25, %s2323_s2 }
   0x9   :  { %p1790_p2 = pnand %p1788_p1, %p1785_p0 }
   0xb   :  { %1793 = shalt.err (!%p1790_p2)
}
   0xc   :  { %s1794_s30 = scalar_lea.vmem %s42_s22, 256  ;;  %p1799_p4 = scmp.lt.s32.totalorder %s42_s22, %s42_s22 }
   0xd   :  { %p1795_p3 = scmp.ne.s32.totalorder %s42_s22, %s1794_s30  ;;  %p1800_p5 = scmp.lt.s32.totalorder %s1794_s30, %s1794_s30 }
   0xf   :  { %p1801_p6 = por %p1800_p5, %p1799_p4 }
  0x11   :  { %p1802_p7 = pnand %p1801_p6, %p1795_p3 }
  0x13   :  { %1805 = shalt.err (!%p1802_p7)
}
  0x14   :  { %s1973_s13 = smov 128   ;;  %s1974_s14 = smov 8  }
  0x15   :  { %47 = dma.hbm_to_vmem [thread:$0]  %s2323_s2, 256, %s42_s22, [#allocation6], %s1973_s13, %s1973_s13, %s1974_s14  }
  0x16   :  { %s1975_s17 = smov [#allocation8]   ;;  %s1976_s19 = smov [#allocation2]  }
  0x17   :  { %s71_s18 = sshll.u32 %s1975_s17, 4  ;;  %s32_s20 = sshll.u32 %s1976_s19, 4  ;;  %s72_s18 = int_to_ptr.vmem [resolvable:$true] %s71_s18  ;;  %s33_s20 = int_to_ptr.vmem [resolvable:$true] %s32_s20 }
  0x18   :  { %s1806_s24 = scalar_lea.hbm %s2328_s7, 512 }
  0x19   :  { %p1807_p8 = scmp.ne.s32.totalorder %s2328_s7, %s1806_s24  ;;  %p1810_p9 = scmp.lt.u32.totalorder %s1806_s24, %s2328_s7 }
  0x1b   :  { %p1812_p10 = pnand %p1810_p9, %p1807_p8 }
  0x1d   :  { %1815 = shalt.err (!%p1812_p10)
}
  0x1e   :  { %s1816_s2 = scalar_lea.vmem %s72_s18, 512  ;;  %p1821_p12 = scmp.lt.s32.totalorder %s72_s18, %s72_s18 }
  0x1f   :  { %p1817_p11 = scmp.ne.s32.totalorder %s72_s18, %s1816_s2  ;;  %p1822_p13 = scmp.lt.s32.totalorder %s1816_s2, %s1816_s2 }
  0x21   :  { %p1823_p0 = por %p1822_p13, %p1821_p12 }
  0x23   :  { %p1824_p1 = pnand %p1823_p0, %p1817_p11 }
  0x25   :  { %1827 = shalt.err (!%p1824_p1)
}
  0x26   :  { %77 = dma.hbm_to_vmem [thread:$0]  %s2328_s7, 512, %s72_s18, [#allocation9], %s1973_s13, %s1973_s13, %s1974_s14  }
  0x27   :  { %s1828_s16 = scalar_lea.hbm %s2322_s1, 64 }
  0x28   :  { %p1829_p2 = scmp.ne.s32.totalorder %s2322_s1, %s1828_s16  ;;  %p1832_p3 = scmp.lt.u32.totalorder %s1828_s16, %s2322_s1 }
  0x2a   :  { %p1834_p4 = pnand %p1832_p3, %p1829_p2 }
  0x2c   :  { %1837 = shalt.err (!%p1834_p4)
}
  0x2d   :  { %s1838_s24 = scalar_lea.vmem %s33_s20, 64  ;;  %p1843_p6 = scmp.lt.s32.totalorder %s33_s20, %s33_s20 }
  0x2e   :  { %p1839_p5 = scmp.ne.s32.totalorder %s33_s20, %s1838_s24  ;;  %p1844_p7 = scmp.lt.s32.totalorder %s1838_s24, %s1838_s24 }
  0x30   :  { %p1845_p8 = por %p1844_p7, %p1843_p6 }
  0x32   :  { %p1846_p9 = pnand %p1845_p8, %p1839_p5 }
  0x34   :  { %1849 = shalt.err (!%p1846_p9)
}
  0x35   :  { %35 = dma.hbm_to_vmem [thread:$0]  %s2322_s1, 64, %s33_s20, [#allocation3]  }
  0x36   :  { %s1977_s25 = smov [#allocation7]   ;;  %s1978_s27 = smov [#allocation10]  }
  0x37   :  { %s57_s26 = sshll.u32 %s1977_s25, 4  ;;  %s84_s28 = sshll.u32 %s1978_s27, 4  ;;  %s58_s26 = int_to_ptr.vmem [resolvable:$true] %s57_s26  ;;  %s85_s28 = int_to_ptr.vmem [resolvable:$true] %s84_s28 }
  0x38   :  { %s1850_s29 = scalar_lea.hbm %s2326_s5, 512 }
  0x39   :  { %p1851_p10 = scmp.ne.s32.totalorder %s2326_s5, %s1850_s29  ;;  %p1854_p11 = scmp.lt.u32.totalorder %s1850_s29, %s2326_s5 }
  0x3b   :  { %p1856_p12 = pnand %p1854_p11, %p1851_p10 }
  0x3d   :  { %1859 = shalt.err (!%p1856_p12)
}
  0x3e   :  { %s1860_s1 = scalar_lea.vmem %s58_s26, 512  ;;  %p1865_p0 = scmp.lt.s32.totalorder %s58_s26, %s58_s26 }
  0x3f   :  { %p1861_p13 = scmp.ne.s32.totalorder %s58_s26, %s1860_s1  ;;  %p1866_p1 = scmp.lt.s32.totalorder %s1860_s1, %s1860_s1 }
  0x41   :  { %p1867_p2 = por %p1866_p1, %p1865_p0 }
  0x43   :  { %p1868_p3 = pnand %p1867_p2, %p1861_p13 }
  0x45   :  { %1871 = shalt.err (!%p1868_p3)
}
  0x46   :  { %63 = dma.hbm_to_vmem [thread:$0]  %s2326_s5, 512, %s58_s26, [#allocation6], %s1973_s13, %s1973_s13, %s1974_s14  }
  0x47   :  { %s1872_s24 = scalar_lea.hbm %s2329_s8, 16 }
  0x48   :  { %p1873_p4 = scmp.ne.s32.totalorder %s2329_s8, %s1872_s24  ;;  %p1876_p5 = scmp.lt.u32.totalorder %s1872_s24, %s2329_s8 }
  0x4a   :  { %p1878_p6 = pnand %p1876_p5, %p1873_p4 }
  0x4c   :  { %1881 = shalt.err (!%p1878_p6)
}
  0x4d   :  { %s1882_s2 = scalar_lea.vmem %s85_s28, 16  ;;  %s1886_s22 = scalar_lea.vmem %s85_s28, 32 }
  0x4e   :  { %p1883_p7 = scmp.ne.s32.totalorder %s85_s28, %s1882_s2  ;;  %p1887_p8 = scmp.lt.s32.totalorder %s85_s28, %s85_s28 }
  0x4f   :  { %p1888_p9 = scmp.lt.s32.totalorder %s1886_s22, %s1882_s2 }
  0x51   :  { %p1889_p10 = por %p1888_p9, %p1887_p8 }
  0x53   :  { %p1890_p11 = pnand %p1889_p10, %p1883_p7 }
  0x55   :  { %1893 = shalt.err (!%p1890_p11)
}
  0x56   :  { %87 = dma.hbm_to_vmem [thread:$0]  %s2329_s8, 16, %s85_s28, [#allocation9]  }
  0x57   :  { %s1979_s14 = smov [#allocation11]   ;;  %s1894_s15 = scalar_lea.hbm %s2331_s10, 16 }
  0x58   :  { %s96_s26 = sshll.u32 %s1979_s14, 4  ;;  %p1895_p12 = scmp.ne.s32.totalorder %s2331_s10, %s1894_s15  ;;  %s97_s26 = int_to_ptr.vmem [resolvable:$true] %s96_s26 }
  0x59   :  { %p1898_p13 = scmp.lt.u32.totalorder %s1894_s15, %s2331_s10 }
  0x5b   :  { %p1900_p0 = pnand %p1898_p13, %p1895_p12 }
  0x5d   :  { %1903 = shalt.err (!%p1900_p0)
}
  0x5e   :  { %s1904_s19 = scalar_lea.vmem %s97_s26, 16  ;;  %s1908_s8 = scalar_lea.vmem %s97_s26, 32 }
  0x5f   :  { %p1905_p1 = scmp.ne.s32.totalorder %s97_s26, %s1904_s19  ;;  %p1909_p2 = scmp.lt.s32.totalorder %s97_s26, %s97_s26 }
  0x60   :  { %p1910_p3 = scmp.lt.s32.totalorder %s1908_s8, %s1904_s19 }
  0x62   :  { %p1911_p4 = por %p1910_p3, %p1909_p2 }
  0x64   :  { %p1912_p5 = pnand %p1911_p4, %p1905_p1 }
  0x66   :  { %1915 = shalt.err (!%p1912_p5)
}
  0x67   :  { %99 = dma.hbm_to_vmem [thread:$0]  %s2331_s10, 16, %s97_s26, [#allocation12]  }
  0x68   :  { %1960 = dma.done.wait [#allocation3], 64  }
  0x69   :  { %1961 = vsyncadd [#allocation3], 4294967232 }
  0x6a   :  { %1962 = dma.done.wait [#allocation6], 768  }
  0x6b   :  { %1963 = vsyncadd [#allocation6], 4294966528 }
  0x6c   :  { %1964 = dma.done.wait [#allocation9], 528  }
  0x6d   :  { %1965 = vsyncadd [#allocation9], 4294966768 }
  0x6e   :  { %1966 = dma.done.wait [#allocation12], 16  }
  0x6f   :  { %1967 = vsyncadd [#allocation12], 4294967280  ;;  %v1980_v0 = vmov 0.0|0.0   ;;  %vm1981_vm0 = vmmov 0   ;;  %v1982_v1 = vmov 0.0   ;;  %vm136_vm1 = vcmask 130048  }
  0x70   :  { %1645 = vmatprep.subr.bf16.mxu1 %v1980_v0  ;;  %1503 = vmatprep.mubr.msk.f32.mxu1 %vm1981_vm0, %v1982_v1  ;;  %v123_v2 = vld [vmem:[#allocation5] sm:$0xff]  ;;  %v124_v3 = vld [vmem:[#allocation5 + $0x8] sm:$0xff]  ;;  %v128_v10 = vld [vmem:[%s2324_s3 + $0x18] sm:$0xff]  ;;  %vm234_vm2 = vcmask 261120   ;;  %vm852_vm3 = vcmask 1043456   ;;  %s1983_s17 = smov 96  }
  0x71   :  { %v125_v4 = vld [vmem:[%s2324_s3] sm:$0xff]  ;;  %v1641_v5 = vpack.c.bf16 %v124_v3, %v123_v2  ;;  %v126_v6 = vld [vmem:[%s2324_s3 + $0x8] sm:$0xff]  ;;  %v127_v9 = vld [vmem:[%s2324_s3 + $0x10] sm:$0xff]  ;;  %vm850_vm5 = vcmask 261124   ;;  %vm1077_vm7 = vcmask 257024   ;;  %s1985_s24 = smov [#allocation14]  }
  0x72   :  { %v118_v7 = vld [vmem:[%s2321_s0] sm:$0xff]  ;;  %v2145_v8 = vpack.c.bf16 %v126_v6, %v125_v4  ;;  %v119_v11 = vld [vmem:[%s2321_s0 + $0x8] sm:$0xff]  ;;  %v2158_v12 = vpack.c.bf16 %v128_v10, %v127_v9  ;;  %v120_v14 = vld [vmem:[%s2321_s0 + $0x10] sm:$0xff]  ;;  %s1367_s7 = sshll.u32 %s1985_s24, 4  ;;  %s1368_s7 = int_to_ptr.vmem [resolvable:$true] %s1367_s7 }
  0x73   :  { %1489 = vmatprep.mubr.msk.f32.mxu0 %vm136_vm1, %v118_v7  ;;  %1642 = vmatprep.subr.bf16.mxu0 %v1641_v5  ;;  %v122_v13 = vld [vmem:[#allocation2] sm:$0xf]  ;;  %v121_v15 = vld [vmem:[%s2321_s0 + $0x18] sm:$0xff]  ;;  %v859_v55 = vld [vmem:[#allocation7 + $0x10] sm:$0xff]  ;;  %s1916_s18 = scalar_lea.vmem %s1368_s7, 64  ;;  %p1921_p7 = scmp.lt.s32.totalorder %s1368_s7, %s1368_s7 }
  0x74   :  { %1647 = vmatpush3.bf16.msra.mxu1 %v2145_v8  ;;  %1644 = vmatpush3.bf16.msra.mxu0 %v1641_v5  ;;  %v2189_v16 = vld [vmem:[%s2325_s4] ss:$0 sm:$0xff]  ;;  %v857_v48 = vld [vmem:[#allocation7] sm:$0xff]  ;;  %v860_v56 = vld [vmem:[#allocation7 + $0x18] sm:$0xff]  ;;  %p1917_p6 = scmp.ne.s32.totalorder %s1368_s7, %s1916_s18  ;;  %p1922_p8 = scmp.lt.s32.totalorder %s1916_s18, %s1916_s18 }
  0x75   :  { %1648 = vmatprep.subr.bf16.mxu1 %v1980_v0  ;;  %1651 = vmatprep.subr.bf16.mxu0 %v1980_v0  ;;  %v858_v49 = vld [vmem:[#allocation7 + $0x8] sm:$0xff]  ;;  %v1697_v59 = vpack.c.bf16 %v860_v56, %v859_v55  ;;  %vm2252_vm4 = vmpackc.low %vm234_vm2, %vm234_vm2  ;;  %v1174_v56 = vld [vmem:[#allocation8] sm:$0xff] }
  0x76   :  { %v1693_v50 = vpack.c.bf16 %v858_v49, %v857_v48  ;;  %v1396_v5 = vld [vmem:[%s2327_s6] ss:$0 sm:$0xff]  ;;  %s1984_s6 = smov 64   ;;  %p1923_p9 = por %p1922_p8, %p1921_p7 }
  0x77   :  { %1490 = vmatmul.mubr.msk.f32.vlgmr.msra.gmra.mrb[0].mxu0 %vm136_vm1, %v119_v11 }
  0x78   :  { %1650 = vmatpush3.bf16.msra.mxu1 %v2158_v12  ;;  %1653 = vmatpush3.bf16.msra.mxu0 %v2145_v8  ;;  %p1924_p10 = pnand %p1923_p9, %p1917_p6 }
  0x79   :  { %1654 = vmatprep.subr.bf16.mxu0 %v1980_v0  ;;  %1657 = vmatprep.subr.bf16.mxu1 %v1980_v0 }
  0x7a   :  { %1492 = vmatprep.mubr.msk.f32.mxu0 %vm136_vm1, %v120_v14 }
  0x7b   :  { %1504 = vmatmul.mubr.msk.f32.vlgmr.msra.gmra.mrb[0].mxu1 %vm234_vm2, %v122_v13  ;;  %1493 = vmatmul.mubr.msk.f32.gmra.mrb[2].mxu0 %vm136_vm1, %v121_v15 }
  0x7c   :  { %1656 = vmatpush3.bf16.msra.mxu0 %v2158_v12  ;;  %1659 = vmatpush3.bf16.msra.mxu1 %v2145_v8 }
  0x7d   :  { %1660 = vmatprep.subr.bf16.mxu1 %v1980_v0  ;;  %1525 = vmatprep.mubr.msk.f32.mxu1 %vm1981_vm0, %v1982_v1 }
  0x7e   :  { %1663 = vmatprep.subr.bf16.mxu0 %v1980_v0  ;;  %1514 = vmatprep.mubr.msk.f32.mxu0 %vm1981_vm0, %v1982_v1 }
  0x80   :  { %1662 = vmatpush3.bf16.msra.mxu1 %v2158_v12 }
  0x81   :  { %1669 = vmatprep.subr.bf16.mxu1 %v1980_v0 }
 0x14a   :  { %v1491_v17 = vpop.f32.mrb[0].mxu0 }
 0x14b   :  { %v215_v18 = vpop.f32.mrb[1].mxu0  ;;  %v221_v32 = vadd.f32 %v1491_v17, %v2189_v16 }
 0x14c   :  { %v216_v19 = vadd.f32 %v2189_v16, %v215_v18 }
 0x14e   :  { %v304_v20 = vpop.f32.mrb[0].mxu1  ;;  %v2202_v24 = vpop.f32.mrb[2].mxu0 }
 0x14f   :  { %v308_v21 = vadd.f32 %v304_v20, %v216_v19  ;;  %v1505_v22 = vpop.f32.mrb[1].mxu1  ;;  %v225_v25 = vpop.f32.mrb[3].mxu0  ;;  %v231_v63 = vadd.f32 %v2202_v24, %v2189_v16 }
 0x150   :  { %v226_v43 = vadd.f32 %v2189_v16, %v225_v25 }
 0x151   :  { %1762 = vtanh.f32 %v308_v21 }
 0x15b   :  { %v2192_v23 = vpop.eup %1762 }
 0x15c   :  { %1515 = vmatmul.mubr.msk.f32.vlgmr.msra.gmra.mrb[4].mxu0 %vm234_vm2, %v2192_v23 }
 0x15d   :  { %1665 = vmatpush3.bf16.msra.mxu0 %v2145_v8  ;;  %1536 = vmatprep.mubr.msk.f32.mxu0 %vm1981_vm0, %v1982_v1 }
 0x15e   :  { %1666 = vmatprep.subr.bf16.mxu0 %v1980_v0 }
 0x161   :  { %1668 = vmatpush3.bf16.msra.mxu0 %v2158_v12 }
 0x162   :  { %1675 = vmatprep.subr.bf16.mxu0 %v1980_v0 }
 0x22f   :  { %v379_v26 = vpop.f32.mrb[4].mxu0 }
 0x230   :  { %v384_v27 = vrot.slane %v379_v26, 4  ;;  %v1516_v28 = vpop.f32.mrb[5].mxu0 }
 0x232   :  { %v386_v29 = vadd.f32 %v384_v27, %v216_v19 }
 0x234   :  { %1764 = vtanh.f32 %v386_v29 }
 0x23e   :  { %v1765_v30 = vpop.eup %1764 }
 0x23f   :  { %v389_v31 = vrot.slane %v1765_v30, 4  ;;  %v853_v60 = vsel %vm852_vm3, %v2192_v23, %v1765_v30 }
 0x241   :  { %1526 = vmatmul.mubr.msk.f32.vlgmr.msra.gmra.mrb[2].mxu1 %vm234_vm2, %v389_v31 }
 0x242   :  { %1671 = vmatpush3.bf16.msra.mxu1 %v2145_v8  ;;  %1547 = vmatprep.mubr.msk.f32.mxu1 %vm1981_vm0, %v1982_v1 }
 0x243   :  { %1672 = vmatprep.subr.bf16.mxu1 %v1980_v0 }
 0x246   :  { %1674 = vmatpush3.bf16.msra.mxu1 %v2158_v12 }
 0x247   :  { %1681 = vmatprep.subr.bf16.mxu1 %v1980_v0 }
 0x314   :  { %v458_v33 = vpop.f32.mrb[2].mxu1 }
 0x315   :  { %v462_v34 = vadd.f32 %v458_v33, %v221_v32  ;;  %v1527_v35 = vpop.f32.mrb[3].mxu1 }
 0x317   :  { %1766 = vtanh.f32 %v462_v34 }
 0x321   :  { %v1767_v36 = vpop.eup %1766 }
 0x322   :  { %1537 = vmatmul.mubr.msk.f32.vlgmr.msra.gmra.mrb[6].mxu0 %vm234_vm2, %v1767_v36 }
 0x323   :  { %1677 = vmatpush3.bf16.msra.mxu0 %v2145_v8  ;;  %1558 = vmatprep.mubr.msk.f32.mxu0 %vm1981_vm0, %v1982_v1 }
 0x324   :  { %1678 = vmatprep.subr.bf16.mxu0 %v1980_v0 }
 0x327   :  { %1680 = vmatpush3.bf16.msra.mxu0 %v2158_v12 }
 0x328   :  { %1687 = vmatprep.subr.bf16.mxu0 %v1980_v0 }
 0x3f5   :  { %v533_v37 = vpop.f32.mrb[6].mxu0 }
 0x3f6   :  { %v538_v38 = vrot.slane %v533_v37, 4  ;;  %v1538_v39 = vpop.f32.mrb[7].mxu0  ;;  %v1059_v37 = vlaneseq }
 0x3f8   :  { %v540_v40 = vadd.f32 %v538_v38, %v221_v32  ;;  %v1062_v38 = vand.u32 127, %v1059_v37  ;;  %v1060_v39 = vshrl.u32 %v1059_v37, 7 }
 0x3fa   :  { %1768 = vtanh.f32 %v540_v40  ;;  %v1067_v40 = vand.u32 3, %v1062_v38 }
 0x3fc   :  { %vm1075_vm6 = vcmp.eq.s32.totalorder %v1060_v39, %v1067_v40 }
 0x404   :  { %v1769_v41 = vpop.eup %1768 }
 0x405   :  { %v543_v42 = vrot.slane %v1769_v41, 4  ;;  %v854_v61 = vsel %vm852_vm3, %v1767_v36, %v1769_v41 }
 0x407   :  { %1548 = vmatmul.mubr.msk.f32.vlgmr.msra.gmra.mrb[4].mxu1 %vm234_vm2, %v543_v42 }
 0x408   :  { %1683 = vmatpush3.bf16.msra.mxu1 %v2145_v8  ;;  %1569 = vmatprep.mubr.msk.f32.mxu1 %vm1981_vm0, %v1982_v1 }
 0x409   :  { %1684 = vmatprep.subr.bf16.mxu1 %v1980_v0 }
 0x40c   :  { %1686 = vmatpush3.bf16.msra.mxu1 %v2158_v12 }
 0x40d   :  { %1694 = vmatprep.subr.bf16.mxu1 %v1693_v50 }
 0x4da   :  { %v612_v44 = vpop.f32.mrb[4].mxu1 }
 0x4db   :  { %v616_v45 = vadd.f32 %v612_v44, %v226_v43  ;;  %v1549_v46 = vpop.f32.mrb[5].mxu1 }
 0x4dd   :  { %1770 = vtanh.f32 %v616_v45 }
 0x4e7   :  { %v1771_v47 = vpop.eup %1770 }
 0x4e8   :  { %1559 = vmatmul.mubr.msk.f32.vlgmr.msra.gmra.mrb[8].mxu0 %vm234_vm2, %v1771_v47 }
 0x4e9   :  { %1689 = vmatpush3.bf16.msra.mxu0 %v2145_v8  ;;  %1580 = vmatprep.mubr.msk.f32.mxu0 %vm1981_vm0, %v1982_v1 }
 0x4ea   :  { %1690 = vmatprep.subr.bf16.mxu0 %v1980_v0 }
 0x4ed   :  { %1692 = vmatpush3.bf16.msra.mxu0 %v2158_v12 }
 0x4ee   :  { %1701 = vmatprep.subr.bf16.mxu0 %v1980_v0 }
 0x5bb   :  { %v687_v51 = vpop.f32.mrb[8].mxu0 }
 0x5bc   :  { %v692_v52 = vrot.slane %v687_v51, 4  ;;  %v1560_v53 = vpop.f32.mrb[9].mxu0 }
 0x5be   :  { %v694_v54 = vadd.f32 %v692_v52, %v226_v43 }
 0x5c0   :  { %1772 = vtanh.f32 %v694_v54 }
 0x5ca   :  { %v1773_v57 = vpop.eup %1772 }
 0x5cb   :  { %v697_v58 = vrot.slane %v1773_v57, 4  ;;  %v855_v62 = vsel %vm852_vm3, %v1771_v47, %v1773_v57  ;;  %v1175_v57 = vld [vmem:[#allocation8 + $0x8] sm:$0xff] }
 0x5cd   :  { %1570 = vmatmul.mubr.msk.f32.vlgmr.msra.gmra.mrb[6].mxu1 %vm234_vm2, %v697_v58 }
 0x5ce   :  { %1696 = vmatpush3.bf16.msra.mxu1 %v1693_v50  ;;  %1591 = vmatprep.mubr.msk.f32.mxu1 %vm234_vm2, %v853_v60 }
 0x5cf   :  { %1698 = vmatprep.subr.bf16.mxu1 %v1697_v59 }
 0x5d2   :  { %1700 = vmatpush3.bf16.msra.mxu1 %v1697_v59  ;;  %v1716_v59 = vpack.c.bf16 %v1175_v57, %v1174_v56 }
 0x5d3   :  { %1709 = vmatprep.subr.bf16.mxu1 %v1980_v0 }
 0x5d5   :  { %1592 = vmatmul.mubr.msk.f32.vlgmr.msra.gmra.mrb[8].mxu1 %vm234_vm2, %v854_v61  ;;  %v1176_v61 = vld [vmem:[#allocation8 + $0x10] sm:$0xff] }
 0x5d6   :  { %1594 = vmatprep.mubr.msk.f32.mxu1 %vm234_vm2, %v855_v62  ;;  %v1177_v62 = vld [vmem:[#allocation8 + $0x18] sm:$0xff] }
 0x6a0   :  { %v766_v2 = vpop.f32.mrb[6].mxu1 }
 0x6a1   :  { %v770_v3 = vadd.f32 %v766_v2, %v231_v63  ;;  %v1571_v4 = vpop.f32.mrb[7].mxu1 }
 0x6a2   :  { %v1262_v4 = vld [vmem:[%s2330_s9] sm:$0xff] }
 0x6a3   :  { %1774 = vtanh.f32 %v770_v3 }
 0x6a8   :  { %v1593_v6 = vpop.f32.mrb[8].mxu1 }
 0x6a9   :  { %v952_v7 = vadd.f32 %v1593_v6, %v1396_v5  ;;  %v946_v8 = vpop.f32.mrb[9].mxu1 }
 0x6aa   :  { %v947_v9 = vadd.f32 %v1396_v5, %v946_v8 }
 0x6ac   :  { %v1752_v10 = vpack.i.bf16 %v952_v7, %v947_v9  ;;  %v1265_v7 = vld [vmem:[%s2330_s9 + $0x18] sm:$0xff]  ;;  %v1407_v9 = vld [vmem:[#allocation10] ss:$0 sm:$0xff] }
 0x6ad   :  { %v1775_v11 = vpop.eup %1774 }
 0x6ae   :  { %1743 = vrot.lane.b32.xlu0 %v1752_v10, %s1983_s17  ;;  %1581 = vmatmul.mubr.msk.f32.vlgmr.msra.gmra.mrb[10].mxu0 %vm234_vm2, %v1775_v11 }
 0x6af   :  { %1605 = vmatprep.mubr.msk.f32.mxu0 %vm1981_vm0, %v1982_v1 }
 0x720   :  { %v1744_v12 = vpop.permute.xlu0 %1743 }
 0x721   :  { %v1746_v13 = vunpack.i.h.bf16 %v1744_v12  ;;  %v1745_v14 = vunpack.i.l.bf16 %v1744_v12 }
 0x723   :  { %v1702_v16 = vpack.c.bf16 %v1746_v13, %v1745_v14 }
 0x725   :  { %1704 = vmatpush3.bf16.xpose.msk.msra.mxu0 %vm2252_vm4, %v1702_v16 }
 0x726   :  { %1705 = vmatprep.subr.bf16.mxu0 %v1980_v0 }
 0x781   :  { %v841_v17 = vpop.f32.mrb[10].mxu0 }
 0x782   :  { %v846_v18 = vrot.slane %v841_v17, 4  ;;  %v1582_v19 = vpop.f32.mrb[11].mxu0 }
 0x784   :  { %v848_v20 = vadd.f32 %v846_v18, %v231_v63  ;;  %v1719_v63 = vpack.c.bf16 %v1177_v62, %v1176_v61 }
 0x786   :  { %1776 = vtanh.f32 %v848_v20 }
 0x790   :  { %v2259_v21 = vpop.eup %1776 }
 0x791   :  { %v856_v22 = vsel %vm852_vm3, %v1775_v11, %v2259_v21  ;;  %851 = vst.msk [vmem:[#allocation14 - $0x4] sm:$0xf0] %vm850_vm5, %v2259_v21 }
 0x792   :  { %1595 = vmatmul.mubr.msk.f32.gmra.mrb[10].mxu1 %vm234_vm2, %v856_v22 }
 0x793   :  { %1616 = vmatprep.mubr.msk.f32.mxu1 %vm1981_vm0, %v1982_v1 }
 0x865   :  { %v1596_v23 = vpop.f32.mrb[10].mxu1 }
 0x866   :  { %v962_v24 = vadd.f32 %v1596_v23, %v1396_v5  ;;  %v956_v25 = vpop.f32.mrb[11].mxu1 }
 0x867   :  { %v957_v26 = vadd.f32 %v1396_v5, %v956_v25  ;;  %v1263_v5 = vld [vmem:[%s2330_s9 + $0x8] sm:$0xff] }
 0x868   :  { %v966_v36 = vrot.slane %v962_v24, 4  ;;  %v1722_v6 = vpack.c.bf16 %v1263_v5, %v1262_v4 }
 0x869   :  { %v1757_v27 = vpack.i.bf16 %v962_v24, %v957_v26 }
 0x86b   :  { %1748 = vrot.lane.b32.xlu0 %v1757_v27, %s1983_s17 }
 0x86f   :  { %1753 = vrot.lane.b32.xlu0 %v1752_v10, %s1984_s6 }
 0x8dd   :  { %v1749_v28 = vpop.permute.xlu0 %1748 }
 0x8de   :  { %v1751_v29 = vunpack.i.h.bf16 %v1749_v28  ;;  %v1750_v30 = vunpack.i.l.bf16 %v1749_v28 }
 0x8e0   :  { %v1706_v31 = vpack.c.bf16 %v1751_v29, %v1750_v30 }
 0x8e1   :  { %v1754_v32 = vpop.permute.xlu0 %1753 }
 0x8e2   :  { %v1756_v33 = vunpack.i.h.bf16 %v1754_v32  ;;  %v1755_v34 = vunpack.i.l.bf16 %v1754_v32  ;;  %1708 = vmatpush3.bf16.xpose.msk.msra.mxu0 %vm2252_vm4, %v1706_v31 }
 0x8e3   :  { %1721 = vmatprep.subr.bf16.mxu0 %v1980_v0 }
 0x8e4   :  { %v1710_v35 = vpack.c.bf16 %v1756_v33, %v1755_v34 }
 0x8e6   :  { %1711 = vmatpush3.bf16.msra.mxu1 %v1710_v35 }
 0x8e7   :  { %1712 = vmatprep.subr.bf16.mxu1 %v1980_v0 }
 0x8e9   :  { %1606 = vmatmul.mubr.msk.f32.vlgmr.msra.gmra.mrb[12].mxu0 %vm234_vm2, %v966_v36 }
 0x8ea   :  { %1638 = vmatprep.mubr.msk.f32.mxu0 %vm1981_vm0, %v1982_v1  ;;  %1723 = vmatpush3.bf16.msra.mxu0 %v1722_v6 }
 0x8eb   :  { %1724 = vmatprep.subr.bf16.mxu0 %v1980_v0 }
 0x9bc   :  { %v1054_v41 = vpop.f32.mrb[12].mxu0 }
 0x9bd   :  { %v1058_v42 = vmul.f32 0.17677669, %v1054_v41  ;;  %v1607_v43 = vpop.f32.mrb[13].mxu0 }
 0x9bf   :  { %v1076_v44 = vsel %vm1075_vm6, %v1058_v42, -1e+30 }
 0x9c0   :  { %v1078_v45 = vsel %vm1077_vm7, %v1076_v44, -inf }
 0x9c1   :  { %1079 = vmax.xlane.f32.xlu1 %v1078_v45 }
 0xa4e   :  { %v1080_v46 = vpop.xlane.xlu1 %1079 }
 0xa4f   :  { %v1081_v47 = vsub.f32 %v1076_v44, %v1080_v46 }
 0xa51   :  { %v1082_v48 = vmul.f32 1.442695, %v1081_v47 }
 0xa53   :  { %1778 = vpow2.f32 %v1082_v48 }
 0xa5d   :  { %v1779_v49 = vpop.eup %1778 }
 0xa5e   :  { %v1084_v50 = vsel %vm1077_vm7, %v1779_v49, 0.0 }
 0xa5f   :  { %1085 = vadd.xlane.f32.xlu1 %v1084_v50 }
 0xa70   :  { %1758 = vrot.lane.b32.xlu1 %v1757_v27, %s1984_s6 }
 0xaec   :  { %v1086_v51 = vpop.xlane.xlu1 %1085 }
 0xaed   :  { %1780 = vrcp.f32 %v1086_v51 }
 0xaf0   :  { %v1759_v52 = vpop.permute.xlu1 %1758 }
 0xaf1   :  { %v1761_v53 = vunpack.i.h.bf16 %v1759_v52  ;;  %v1760_v54 = vunpack.i.l.bf16 %v1759_v52 }
 0xaf3   :  { %v1713_v55 = vpack.c.bf16 %v1761_v53, %v1760_v54 }
 0xaf5   :  { %1714 = vmatpush3.bf16.msra.mxu1 %v1713_v55 }
 0xaf6   :  { %1715 = vmatprep.subr.bf16.mxu1 %v1980_v0 }
 0xaf7   :  { %v1781_v58 = vpop.eup %1780 }
 0xaf8   :  { %v1088_v60 = vmul.f32 %v1781_v58, %v1779_v49 }
 0xafa   :  { %1617 = vmatmul.mubr.msk.f32.vlgmr.msra.gmra.mrb[12].mxu1 %vm234_vm2, %v1088_v60 }
 0xafb   :  { %1717 = vmatpush3.bf16.msra.mxu1 %v1716_v59  ;;  %1627 = vmatprep.mubr.msk.f32.mxu1 %vm1981_vm0, %v1982_v1  ;;  %v1264_v1 = vld [vmem:[%s2330_s9 + $0x10] sm:$0xff] }
 0xafc   :  { %1718 = vmatprep.subr.bf16.mxu1 %v1980_v0  ;;  %v1725_v8 = vpack.c.bf16 %v1265_v7, %v1264_v1 }
 0xafe   :  { %1726 = vmatpush3.bf16.msra.mxu0 %v1725_v8 }
 0xaff   :  { %1720 = vmatpush3.bf16.msra.mxu1 %v1719_v63 }
 0xbcd   :  { %v1170_v2 = vpop.f32.mrb[12].mxu1 }
 0xbce   :  { %v1618_v3 = vpop.f32.mrb[13].mxu1  ;;  %1628 = vmatmul.mubr.msk.f32.vlgmr.msra.gmra.mrb[14].mxu1 %vm234_vm2, %v1170_v2 }
 0xca1   :  { %v1254_v10 = vpop.f32.mrb[14].mxu1 }
 0xca2   :  { %v1255_v11 = vadd.f32 %v1407_v9, %v1254_v10  ;;  %v1629_v12 = vpop.f32.mrb[15].mxu1 }
 0xca4   :  { %v1259_v13 = vrot.slane %v1255_v11, 4 }
 0xca6   :  { %v1261_v14 = vadd.f32 %v2259_v21, %v1259_v13 }
 0xca8   :  { %v1274_v15 = vrot.slane %v1261_v14, 4 }
 0xcaa   :  { %1639 = vmatmul.mubr.msk.f32.vlgmr.msra.gmra.mrb[14].mxu0 %vm234_vm2, %v1274_v15 }
 0xcab   :  { %1927 = shalt.err (!%p1924_p10)
}
 0xcac   :  { %s1928_s27 = scalar_lea.hbm %s2333_s12, 64 }
 0xcad   :  { %p1929_p11 = scmp.ne.s32.totalorder %s2333_s12, %s1928_s27  ;;  %p1932_p12 = scmp.lt.u32.totalorder %s1928_s27, %s2333_s12 }
 0xcaf   :  { %p1934_p13 = pnand %p1932_p12, %p1929_p11 }
 0xcb1   :  { %1937 = shalt.err (!%p1934_p13)
}
 0xcb2   :  { %1370 = dma.vmem_to_hbm [thread:$0]  %s1368_s7, 64, %s2333_s12, [#allocation15]   ;;  %v1409_v0 = vld [vmem:[#allocation11] ss:$0 sm:$0xff]  ;;  %vm1349_vm8 = vcmask 60416  }
 0xcb3   :  { %s1986_s26 = smov [#allocation13]  }
 0xcb4   :  { %s1357_s29 = sshll.u32 %s1986_s26, 4  ;;  %s1358_s29 = int_to_ptr.vmem [resolvable:$true] %s1357_s29 }
 0xcb5   :  { %s1938_s30 = scalar_lea.vmem %s1358_s29, 64  ;;  %p1943_p1 = scmp.lt.s32.totalorder %s1358_s29, %s1358_s29 }
 0xcb6   :  { %p1939_p0 = scmp.ne.s32.totalorder %s1358_s29, %s1938_s30  ;;  %p1944_p2 = scmp.lt.s32.totalorder %s1938_s30, %s1938_s30 }
 0xcb8   :  { %p1945_p3 = por %p1944_p2, %p1943_p1 }
 0xcba   :  { %p1946_p4 = pnand %p1945_p3, %p1939_p0 }
 0xd7d   :  { %v1343_v16 = vpop.f32.mrb[14].mxu0 }
 0xd7e   :  { %v1344_v17 = vadd.f32 %v1409_v0, %v1343_v16  ;;  %v1640_v18 = vpop.f32.mrb[15].mxu0 }
 0xd80   :  { %v1347_v19 = vmul.f32 1.442695, %v1344_v17 }
 0xd82   :  { %1782 = vpow2.f32 %v1347_v19 }
 0xd8c   :  { %v1783_v20 = vpop.eup %1782 }
 0xd8d   :  { %1350 = vst.msk [vmem:[#allocation13] sm:$0xf] %vm1349_vm8, %v1783_v20 }
 0xd8e   :  { %1949 = shalt.err (!%p1946_p4)
}
 0xd8f   :  { %s1950_s16 = scalar_lea.hbm %s2332_s11, 64 }
 0xd90   :  { %p1951_p5 = scmp.ne.s32.totalorder %s2332_s11, %s1950_s16  ;;  %p1954_p6 = scmp.lt.u32.totalorder %s1950_s16, %s2332_s11 }
 0xd92   :  { %p1956_p7 = pnand %p1954_p6, %p1951_p5 }
 0xd94   :  { %1959 = shalt.err (!%p1956_p7)
}
 0xd95   :  { %1360 = dma.vmem_to_hbm [thread:$0]  %s1358_s29, 64, %s2332_s11, [#allocation4]  }
 0xd96   :  { %1968 = dma.done.wait [#allocation4], 64  }
 0xd97   :  { %1969 = vsyncadd [#allocation4], 4294967232 }
 0xd98   :  { %1970 = dma.done.wait [#allocation15], 64  }
 0xd99   :  { %1971 = vsyncadd [#allocation15], 4294967232 }
 0xd9a   :  { %1377 = vsyncpa [#allocation3], 1 }
 0xd9b   :  { %1378 = vsyncpa [#allocation6], 1 }
 0xd9c   :  { %1379 = vsyncpa [#allocation9], 1 }
 0xd9d   :  { %1380 = vsyncpa [#allocation12], 1 }
 0xd9e   :  { %1381 = vsyncpa [#allocation4], 1 }
 0xd9f   :  { %1382 = vsyncpa [#allocation15], 1 }

</bundles_post_ra>
